<compile_context>
chip_gen: v7x
topology: tpu7x:2x2x1
jax: 0.10.0
libtpu: 0.0.40
codegen_flags: <defaults>
</compile_context>

<pallas_src>
import numpy as np
import jax
import jax.numpy as jnp
from jax.experimental import pallas as pl
from jax.experimental.pallas import tpu as pltpu


# ----------------------------------------------------------------------------
# Host-side setup: 2-D grid-graph Laplacian eigenvectors (replaces networkx +
# numpy.linalg.eigh from __init__ -- parameter/buffer setup, not the hot path).
# ----------------------------------------------------------------------------
def grid_laplacian_sorted_eigvecs(grid_size: int) -> np.ndarray:
    n = grid_size * grid_size
    A = np.zeros((n, n), dtype=np.float64)

    def idx(i, j):
        return i * grid_size + j

    for i in range(grid_size):
        for j in range(grid_size):
            if i + 1 < grid_size:
                A[idx(i, j), idx(i + 1, j)] = 1.0
                A[idx(i + 1, j), idx(i, j)] = 1.0
            if j + 1 < grid_size:
                A[idx(i, j), idx(i, j + 1)] = 1.0
                A[idx(i, j + 1), idx(i, j)] = 1.0

    D = np.diag(A.sum(axis=0))
    L = D - A
    eigenvals, eigenvecs = np.linalg.eigh(L)
    sorted_eigenvecs = eigenvecs[:, np.argsort(eigenvals)]
    # TODO(synk): degenerate eigenvalues mean eigenvector order/sign within
    # degenerate subspaces may differ from torch.linalg.eigh's buffer.
    return np.asarray(sorted_eigenvecs, dtype=np.float32)  # (N, N)


# ----------------------------------------------------------------------------
# Kernel 1: K-tiled fc1 matmul.
#   emb[n, d] = sum_k eig[k, n] * W[d, k] + b[d]
# Inputs are kept in their native layouts (eig: (K, N), W: (D, K)); the kernel
# computes the standard (td, tk) @ (tk, tn) product and transposes the f32
# accumulator once per output block at finalize (cheap XLU op, runs once).
# ----------------------------------------------------------------------------
def _fc1_kernel(w_ref, eig_ref, b_ref, emb_ref, acc_ref):
    @pl.when(pl.program_id(2) == 0)
    def _init():
        acc_ref[...] = jnp.zeros_like(acc_ref)

    acc_ref[...] += jnp.dot(w_ref[...], eig_ref[...],
                            preferred_element_type=jnp.float32)

    @pl.when(pl.program_id(2) == pl.num_programs(2) - 1)
    def _finalize():
        # acc is (td, tn); output block is (tn, td); bias block is (1, td).
        emb_ref[...] = (acc_ref[...].T + b_ref[...]).astype(emb_ref.dtype)


def _compute_embedding(sorted_eigenvecs, fc1_weight, fc1_bias, out_dtype):
    K, N = sorted_eigenvecs.shape          # square: K == N
    D = fc1_weight.shape[0]

    # Tiny problems: a separate pallas_call (launch + HBM round trip) would
    # dominate; a single XLA dot is cheaper and avoids materializing any
    # transpose (contraction dims expressed directly).
    use_pallas = (N % 128 == 0) and (D % 128 == 0) and (K % 128 == 0)
    if not use_pallas:
        emb = jax.lax.dot_general(
            sorted_eigenvecs, fc1_weight,
            dimension_numbers=(((0,), (1,)), ((), ())),
            precision=jax.lax.Precision.HIGHEST,
            preferred_element_type=jnp.float32)
        return (emb + fc1_bias[None, :]).astype(out_dtype)

    tn = td = tk = 128                     # MXU-shaped tiles; trivially fit VMEM
    bias2 = fc1_bias.reshape(1, D)

    return pl.pallas_call(
        _fc1_kernel,
        out_shape=jax.ShapeDtypeStruct((N, D), out_dtype),
        grid_spec=pltpu.PrefetchScalarGridSpec(
            num_scalar_prefetch=0,
            grid=(N // tn, D // td, K // tk),          # K (reduction) last
            in_specs=[
                pl.BlockSpec((td, tk), lambda n, d, k: (d, k)),  # W (D, K)
                pl.BlockSpec((tk, tn), lambda n, d, k: (k, n)),  # eig (K, N)
                pl.BlockSpec((1, td), lambda n, d, k: (0, d)),   # bias
            ],
            out_specs=pl.BlockSpec((tn, td), lambda n, d, k: (n, d)),
            scratch_shapes=[pltpu.VMEM((td, tn), jnp.float32)],
        ),
        compiler_params=pltpu.CompilerParams(
            dimension_semantics=("parallel", "parallel", "arbitrary")),
    )(fc1_weight, sorted_eigenvecs, bias2)


# ----------------------------------------------------------------------------
# Kernel 2: streaming broadcast-add over the flattened (B, N*D) view,
# 2-D tiled (batch rows x lane columns).  Pure vld / vadd / vst stream.
# ----------------------------------------------------------------------------
def _add_kernel(emb_ref, x_ref, o_ref):
    # emb_ref: (1, cc), x_ref/o_ref: (bb, cc); sublane broadcast of emb row.
    o_ref[...] = x_ref[...] + emb_ref[...]


def _choose_add_tiles(B, ND, itemsize, target_bytes):
    """Pick (row_block, col_block) with col a multiple of 128 and
    row*col*itemsize ~ target_bytes, bounded independent of model size."""
    # Row (sublane) blocking.
    if B <= 8:
        bb = B                                   # full dim satisfies tiling rule
    else:
        bb = (min(B, 64) // 8) * 8
        if B >= 16:
            # Keep >= 2 row blocks so "parallel" really shards across v7x's 2 TCs.
            half = -(-B // 2)
            bb = min(bb, max(8, (half // 8) * 8))
        bb = max(8, bb)
    # Column (lane) blocking: bound bytes per block (~2 MiB fits the smallest
    # default scoped-VMEM limit with double-buffered x + out + emb blocks).
    if ND <= 128:
        cc = ND
    else:
        cc = (max(1, target_bytes // (bb * itemsize)) // 128) * 128
        cc = max(128, min(cc, ND))
    return bb, cc


def spectral_embedding_forward(x, sorted_eigenvecs, fc1_weight, fc1_bias,
                               *, block_target_bytes=2 << 20, donate_x=False):
    """x: (B, N, d_model); sorted_eigenvecs: (N, N);
    fc1_weight: (d_model, N) [PyTorch layout]; fc1_bias: (d_model,)."""
    B, N, D = x.shape
    ND = N * D

    # Hoisted one-time embedding (already in x.dtype).
    emb = _compute_embedding(sorted_eigenvecs, fc1_weight, fc1_bias, x.dtype)
    emb2 = emb.reshape(1, ND)          # lane-dense row
    x2 = x.reshape(B, ND)              # contiguous reshape -> lane-dense last dim

    bb, cc = _choose_add_tiles(B, ND, jnp.dtype(x.dtype).itemsize,
                               block_target_bytes)
    n_rows = pl.cdiv(B, bb)
    n_cols = pl.cdiv(ND, cc)

    extra_kwargs = {}
    if donate_x:
        # x2 is operand index 1; reuse its HBM buffer for the output.
        extra_kwargs["input_output_aliases"] = {1: 0}

    out2 = pl.pallas_call(
        _add_kernel,
        out_shape=jax.ShapeDtypeStruct((B, ND), x.dtype),
        grid_spec=pltpu.PrefetchScalarGridSpec(
            num_scalar_prefetch=0,
            # Columns outer, rows inner: emb's block index depends only on the
            # outer axis, so it is not re-fetched along the inner row loop.
            grid=(n_cols, n_rows),
            in_specs=[
                pl.BlockSpec((1, cc), lambda j, i: (0, j)),    # emb (inner-invariant)
                pl.BlockSpec((bb, cc), lambda j, i: (i, j)),   # x tile
            ],
            out_specs=pl.BlockSpec((bb, cc), lambda j, i: (i, j)),
        ),
        compiler_params=pltpu.CompilerParams(
            dimension_semantics=("parallel", "parallel")),
        **extra_kwargs,
    )(emb2, x2)

    return out2.reshape(B, N, D)


# ----------------------------------------------------------------------------
# Pure-JAX reference (for correctness check).
# ----------------------------------------------------------------------------
def reference_forward(x, sorted_eigenvecs, fc1_weight, fc1_bias):
    emb = jnp.transpose(sorted_eigenvecs) @ jnp.transpose(fc1_weight) + fc1_bias
    return x + emb[None, :, :]


def _run_case(key, grid_size, d_model, batch, **fwd_kwargs):
    N = grid_size * grid_size
    sorted_eigenvecs = jnp.asarray(grid_laplacian_sorted_eigvecs(grid_size))

    k_x, k_w, k_b = jax.random.split(key, 3)
    bound = 1.0 / np.sqrt(N)
    fc1_weight = jax.random.uniform(k_w, (d_model, N), jnp.float32, -bound, bound)
    fc1_bias = jax.random.uniform(k_b, (d_model,), jnp.float32, -bound, bound)
    x = jax.random.normal(k_x, (batch, N, d_model), dtype=jnp.float32)

    out = spectral_embedding_forward(x, sorted_eigenvecs, fc1_weight, fc1_bias,
                                     **fwd_kwargs)
    out = jax.block_until_ready(out)
    ref = reference_forward(x, sorted_eigenvecs, fc1_weight, fc1_bias)
    np.testing.assert_allclose(np.asarray(out), np.asarray(ref),
                               rtol=1e-5, atol=1e-5)


if __name__ == "__main__":
    key = jax.random.PRNGKey(0)
    k1, k2, k3 = jax.random.split(key, 3)

    # Case 1: module-sized small config (tiny emb -> jnp fc1 path + add kernel).
    _run_case(k1, grid_size=4, d_model=32, batch=2)

    # Case 2: exercises the K-tiled Pallas fc1 matmul and the 2-D (row x lane)
    # tiling of the add kernel (small block target forces multiple col blocks).
    _run_case(k2, grid_size=16, d_model=256, batch=4,
              block_target_bytes=64 * 1024)

    # Case 3: larger batch exercises multi-row blocking with the row cap and
    # emb reuse across the inner (row) grid axis.
    _run_case(k3, grid_size=16, d_model=256, batch=24)

    print("KERNEL_OK")
</pallas_src>

<mosaic_0001>
module attributes {stable_mosaic.version = 11 : i64} {
  func.func @_add_kernel(%arg0: i32, %arg1: i32, %arg2: memref<1x512xf32, #tpu.memory_space<vmem>>, %arg3: memref<2x512xf32, #tpu.memory_space<vmem>>, %arg4: memref<2x512xf32, #tpu.memory_space<vmem>>) attributes {dimension_semantics = [#tpu.dimension_semantics<parallel>, #tpu.dimension_semantics<parallel>], iteration_bounds = array<i64: 1, 1>, scalar_prefetch = 0 : i64, scratch_operands = 0 : i64, tpu.core_type = #tpu.core_type<tc>, window_params = [{transform_indices = @transform_0, window_bounds = array<i64: 1, 512>}, {transform_indices = @transform_1, window_bounds = array<i64: 2, 512>}, {transform_indices = @transform_2, window_bounds = array<i64: 2, 512>}]} {
    %c0 = arith.constant 0 : index
    %c0_0 = arith.constant 0 : index
    %0 = vector.load %arg3[%c0, %c0_0] : memref<2x512xf32, #tpu.memory_space<vmem>>, vector<2x512xf32>
    %c0_1 = arith.constant 0 : index
    %c0_2 = arith.constant 0 : index
    %1 = vector.load %arg2[%c0_1, %c0_2] : memref<1x512xf32, #tpu.memory_space<vmem>>, vector<1x512xf32>
    %2 = vector.broadcast %1 : vector<1x512xf32> to vector<2x512xf32>
    %3 = arith.addf %0, %2 : vector<2x512xf32>
    %c0_3 = arith.constant 0 : index
    %c0_4 = arith.constant 0 : index
    %4 = vector.load %arg4[%c0_3, %c0_4] : memref<2x512xf32, #tpu.memory_space<vmem>>, vector<2x512xf32>
    tpu.vector_store %arg4[%c0_3, %c0_4], %3 {strides = array<i32>} : memref<2x512xf32, #tpu.memory_space<vmem>>, vector<2x512xf32>,
    return
  }
  func.func @transform_0(%arg0: i32, %arg1: i32) -> (i32, i32) {
    %c0_i32 = arith.constant 0 : i32
    %c0_i32_0 = arith.constant 0 : i32
    return %c0_i32, %arg0 : i32, i32
  }
  func.func @transform_1(%arg0: i32, %arg1: i32) -> (i32, i32) {
    %c0_i32 = arith.constant 0 : i32
    return %arg1, %arg0 : i32, i32
  }
  func.func @transform_2(%arg0: i32, %arg1: i32) -> (i32, i32) {
    %c0_i32 = arith.constant 0 : i32
    return %arg1, %arg0 : i32, i32
  }
}

</mosaic_0001>

<bundles_post_ra>
// kernel: tpu_custom_call.1
= control target key start
LH: loop header
LB: loop body
LE: loop exit
PB: predicated region body
PF: predicated region fallthrough
CT: control target
= control target key end

     0   :  { %7 = vsyncpa [#allocation3], 0  ;;  %s222_s0 = inlined_call_operand.hbm [shape: f32[1,512], index: 0, kind: input, shape index: {}]   ;;  %s223_s1 = inlined_call_operand.hbm [shape: f32[2,512], index: 1, kind: input, shape index: {}]   ;;  %s224_s2 = inlined_call_operand.hbm [shape: f32[2,512], index: 2, kind: output, shape index: {}]  }
   0x1   :  { %8 = vsyncpa [#allocation6], 0 }
   0x2   :  { %9 = vsyncpa [#allocation4], 0  ;;  %s167_s9 = smov [#allocation2]   ;;  %s168_s11 = smov [#allocation5]  }
   0x3   :  { %s16_s10 = sshll.u32 %s167_s9, 4  ;;  %s26_s12 = sshll.u32 %s168_s11, 4  ;;  %s17_s10 = int_to_ptr.vmem [resolvable:$true] %s16_s10  ;;  %s27_s12 = int_to_ptr.vmem [resolvable:$true] %s26_s12 }
   0x4   :  { %s95_s15 = scalar_lea.hbm %s222_s0, 64 }
   0x5   :  { %p96_p0 = scmp.ne.s32.totalorder %s222_s0, %s95_s15  ;;  %p99_p1 = scmp.lt.u32.totalorder %s95_s15, %s222_s0 }
   0x7   :  { %p101_p2 = pnand %p99_p1, %p96_p0 }
   0x9   :  { %104 = shalt.err (!%p101_p2)
}
   0xa   :  { %s105_s20 = scalar_lea.vmem %s17_s10, 64  ;;  %p110_p4 = scmp.lt.s32.totalorder %s17_s10, %s17_s10 }
   0xb   :  { %p106_p3 = scmp.ne.s32.totalorder %s17_s10, %s105_s20  ;;  %p111_p5 = scmp.lt.s32.totalorder %s105_s20, %s105_s20 }
   0xd   :  { %p112_p6 = por %p111_p5, %p110_p4 }
   0xf   :  { %p113_p7 = pnand %p112_p6, %p106_p3 }
  0x11   :  { %116 = shalt.err (!%p113_p7)
}
  0x12   :  { %19 = dma.hbm_to_vmem [thread:$0]  %s222_s0, 64, %s17_s10, [#allocation3]  }
  0x13   :  { %s117_s25 = scalar_lea.hbm %s223_s1, 128 }
  0x14   :  { %p118_p8 = scmp.ne.s32.totalorder %s223_s1, %s117_s25  ;;  %p121_p9 = scmp.lt.u32.totalorder %s117_s25, %s223_s1 }
  0x16   :  { %p123_p10 = pnand %p121_p9, %p118_p8 }
  0x18   :  { %126 = shalt.err (!%p123_p10)
}
  0x19   :  { %s127_s30 = scalar_lea.vmem %s27_s12, 128  ;;  %p132_p12 = scmp.lt.s32.totalorder %s27_s12, %s27_s12 }
  0x1a   :  { %p128_p11 = scmp.ne.s32.totalorder %s27_s12, %s127_s30  ;;  %p133_p13 = scmp.lt.s32.totalorder %s127_s30, %s127_s30 }
  0x1c   :  { %p134_p0 = por %p133_p13, %p132_p12 }
  0x1e   :  { %p135_p1 = pnand %p134_p0, %p128_p11 }
  0x20   :  { %138 = shalt.err (!%p135_p1)
}
  0x21   :  { %29 = dma.hbm_to_vmem [thread:$0]  %s223_s1, 128, %s27_s12, [#allocation6]  }
  0x22   :  { %161 = dma.done.wait [#allocation3], 64  }
  0x23   :  { %162 = vsyncadd [#allocation3], 4294967232 }
  0x24   :  { %163 = dma.done.wait [#allocation6], 128  }
  0x25   :  { %164 = vsyncadd [#allocation6], 4294967168  ;;  %v39_v0 = vlaneseq  ;;  %v169_v1 = vmov 1983009808   ;;  %v37_v9 = vld [vmem:[#allocation2] sm:$0xf] }
  0x26   :  { %v58_v2 = vunpack.c.l.s4 %v169_v1  ;;  %v36_v19 = vld [vmem:[#allocation5] sm:$0xff]  ;;  %s170_s1 = smov [#allocation7]  }
  0x27   :  { %v40_v3 = vshrl.u32 %v39_v0, 7  ;;  %s81_s4 = sshll.u32 %s170_s1, 4  ;;  %s82_s4 = int_to_ptr.vmem [resolvable:$true] %s81_s4 }
  0x28   :  { %v59_v4 = vunpack.c.0.s8 %v58_v2  ;;  %s139_s5 = scalar_lea.vmem %s82_s4, 128  ;;  %p144_p3 = scmp.lt.s32.totalorder %s82_s4, %s82_s4 }
  0x29   :  { %v41_v5 = vsub.s32 0, %v40_v3  ;;  %v45_v6 = vsub.s32 1, %v40_v3  ;;  %v49_v7 = vsub.s32 2, %v40_v3  ;;  %v53_v8 = vsub.s32 3, %v40_v3  ;;  %p140_p2 = scmp.ne.s32.totalorder %s82_s4, %s139_s5  ;;  %p145_p4 = scmp.lt.s32.totalorder %s139_s5, %s139_s5 }
  0x2a   :  { %v62_v10 = vsub.s32 %v59_v4, %v40_v3 }
  0x2b   :  { %v42_v11 = vrot.slane %v37_v9, %v41_v5  ;;  %v46_v12 = vrot.slane %v37_v9, %v45_v6  ;;  %v50_v13 = vrot.slane %v37_v9, %v49_v7  ;;  %v54_v14 = vrot.slane %v37_v9, %v53_v8  ;;  %p146_p5 = por %p145_p4, %p144_p3 }
  0x2d   :  { %v55_v15 = vcombine.low %v42_v11, %v46_v12  ;;  %v56_v16 = vcombine.low %v50_v13, %v54_v14  ;;  %p147_p6 = pnand %p146_p5, %p140_p2 }
  0x2f   :  { %v63_v17 = vrot.slane %v55_v15, %v62_v10  ;;  %v70_v18 = vrot.slane %v56_v16, %v62_v10 }
  0x31   :  { %v71_v20 = vcombine.low %v63_v17, %v70_v18 }
  0x33   :  { %v73_v21 = vadd.f32 %v71_v20, %v36_v19 }
  0x35   :  { %74 = vst [vmem:[#allocation7] sm:$0xff] %v73_v21 }
  0x36   :  { %150 = shalt.err (!%p147_p6)
}
  0x37   :  { %s151_s8 = scalar_lea.hbm %s224_s2, 128 }
  0x38   :  { %p152_p7 = scmp.ne.s32.totalorder %s224_s2, %s151_s8  ;;  %p155_p8 = scmp.lt.u32.totalorder %s151_s8, %s224_s2 }
  0x3a   :  { %p157_p9 = pnand %p155_p8, %p152_p7 }
  0x3c   :  { %160 = shalt.err (!%p157_p9)
}
  0x3d   :  { %84 = dma.vmem_to_hbm [thread:$0]  %s82_s4, 128, %s224_s2, [#allocation4]  }
  0x3e   :  { %165 = dma.done.wait [#allocation4], 128  }
  0x3f   :  { %166 = vsyncadd [#allocation4], 4294967168 }
  0x40   :  { %88 = vsyncpa [#allocation3], 1 }
  0x41   :  { %89 = vsyncpa [#allocation6], 1 }
  0x42   :  { %90 = vsyncpa [#allocation4], 1 }

</bundles_post_ra>
